<compile_context>
chip_gen: v5e
topology: v5e:2x2
jax: 0.10.0
libtpu: 0.0.40
codegen_flags: <defaults>
</compile_context>

<pallas_src>
import jax
import jax.numpy as jnp
from jax.experimental import pallas as pl
from jax.experimental.pallas import tpu as pltpu

_LANE = 128
_SUBLANE = 8


def _round_up(n, m):
    return ((n + m - 1) // m) * m


def _pad2d(x, rows, cols, value=0.0):
    return jnp.pad(x, ((0, rows - x.shape[0]), (0, cols - x.shape[1])),
                   constant_values=value)


def _is_v5():
    """v5e/v5p have a 128-wide MXU -> prefer two K=128 dots over one K=256."""
    try:
        return "v5" in jax.devices()[0].device_kind.lower()
    except Exception:  # pragma: no cover - conservative fallback
        return False


def _make_rnn_interp_kernel(num_steps: int, mp: int, hp: int,
                            use_masks: bool, split_cell: bool):
    """Kernel factory.

    num_steps  = T-1 (static unroll count)
    mp, hp     = lane-padded measure / hidden sizes
    use_masks  = apply dropout masks (training mode); skipped in eval mode
    split_cell = v5e specialization: two K=128 dots instead of one K=256 dot
    """

    def kernel(*refs):
        if use_masks:
            (x_ref, i_mask_ref, r_mask_ref,
             w_cat_ref, b_cell_ref, w_out_ref, b_out_ref, o_ref) = refs
        else:
            (x_ref, w_cat_ref, b_cell_ref, w_out_ref, b_out_ref, o_ref) = refs

        Bp = x_ref.shape[1]

        # Hoist only the small per-row operands.  The weight matrices are read
        # from their VMEM refs inside each dot (streamed RHS), so no ~48-vreg
        # live range exists across the unrolled recurrence.
        b_cell = jnp.broadcast_to(b_cell_ref[...], (Bp, hp))     # b_ih + b_hh
        b_out = jnp.broadcast_to(b_out_ref[...], (Bp, mp))
        if use_masks:
            i_mask = i_mask_ref[...]                             # (Bp, Mp)
            r_mask = r_mask_ref[...]                             # (Bp, Hp)

        h = jnp.zeros((Bp, hp), jnp.float32)
        o_prev = jnp.zeros((Bp, mp), jnp.float32)                # NaNs at t=0 filled with 0

        # Fully unrolled recurrence (static trip count, static VMEM indices).
        for t in range(num_steps):
            x = x_ref[t]                                         # (Bp, Mp), full (8,128) tiles
            x = jnp.where(jnp.isnan(x), o_prev, x)               # impute missing values
            if use_masks:
                x = x * i_mask
                h_in = h * r_mask
            else:
                h_in = h

            if split_cell:
                # v5e: two K=128 pushes onto the 128-wide MXU, no concat value.
                pre = (jnp.dot(x, w_cat_ref[pl.ds(0, mp), :],
                               preferred_element_type=jnp.float32)
                       + jnp.dot(h_in, w_cat_ref[pl.ds(mp, hp), :],
                                 preferred_element_type=jnp.float32)
                       + b_cell)
            else:
                # v6e/v7x: single K=256 push onto the 256-wide MXU.
                xh = jnp.concatenate([x, h_in], axis=-1)         # (Bp, Mp+Hp), lane-aligned
                pre = jnp.dot(xh, w_cat_ref[...],
                              preferred_element_type=jnp.float32) + b_cell

            h = jnp.tanh(pre)                                    # (Bp, Hp)
            o_prev = jnp.dot(h, w_out_ref[...],
                             preferred_element_type=jnp.float32) + b_out
            o_ref[t] = o_prev                                    # full-tile, unmasked store

    return kernel


def prepare_padded_params(params):
    """Pad + fuse the weights once (constant across forward calls)."""
    M, H = params["w_ih"].shape
    Mp = _round_up(M, _LANE)
    Hp = _round_up(H, _LANE)

    w_ih_p = _pad2d(params["w_ih"].astype(jnp.float32), Mp, Hp)
    w_hh_p = _pad2d(params["w_hh"].astype(jnp.float32), Hp, Hp)
    return {
        "M": M, "H": H, "Mp": Mp, "Hp": Hp,
        "w_cat": jnp.concatenate([w_ih_p, w_hh_p], axis=0),       # (Mp+Hp, Hp)
        "b_cell": _pad2d((params["b_ih"] + params["b_hh"]).astype(jnp.float32), 1, Hp),
        "w_out": _pad2d(params["w_out"].astype(jnp.float32), Hp, Mp),
        "b_out": _pad2d(params["b_out"].astype(jnp.float32), 1, Mp),
    }


def rnn_model_interp_forward(val_seq, inaux, padded, i_mask=None, r_mask=None):
    """val_seq: (T, B, M) float32 (may contain NaN). Returns (T-1, B, M).

    `padded` is the cached output of prepare_padded_params().
    i_mask / r_mask: optional dropout masks (training mode).  In eval mode
    they are all ones, so pass None and the kernel skips the multiplies.
    """
    del inaux  # accepted by forward() but unused by the base-class forward
    T, B, M = val_seq.shape
    assert T >= 2, "need at least 2 time steps (loop emits T-1 outputs)"
    assert M == padded["M"]
    H, Mp, Hp = padded["H"], padded["Mp"], padded["Hp"]
    Bp = _round_up(B, _SUBLANE)     # fill the (8,128) f32 sublane tile

    # Zero-pad lanes (M -> Mp) and batch rows (B -> Bp).  Padded lanes stay
    # exactly zero through the recurrence; padded batch rows are independent
    # of valid rows and are sliced off at the end.
    x_p = jnp.pad(val_seq.astype(jnp.float32),
                  ((0, 0), (0, Bp - B), (0, Mp - M)))

    use_masks = (i_mask is not None) or (r_mask is not None)
    inputs = [x_p]
    if use_masks:
        i_m = jnp.ones((B, M), jnp.float32) if i_mask is None else i_mask
        r_m = jnp.ones((B, H), jnp.float32) if r_mask is None else r_mask
        inputs.append(_pad2d(i_m.astype(jnp.float32), Bp, Mp, value=1.0))
        inputs.append(_pad2d(r_m.astype(jnp.float32), Bp, Hp, value=1.0))
    inputs += [padded["w_cat"], padded["b_cell"], padded["w_out"], padded["b_out"]]

    vmem = pl.BlockSpec(memory_space=pltpu.MemorySpace.VMEM)

    out_p = pl.pallas_call(
        _make_rnn_interp_kernel(T - 1, Mp, Hp, use_masks, split_cell=_is_v5()),
        out_shape=jax.ShapeDtypeStruct((T - 1, Bp, Mp), jnp.float32),
        in_specs=[vmem] * len(inputs),      # everything VMEM-resident, single DMA each
        out_specs=vmem,                     # single lane-dense writeback at kernel end
    )(*inputs)

    return out_p[:, :B, :M]


def _reference_forward(val_seq, params, i_mask, r_mask):
    """Pure-JAX reference mirroring the PyTorch semantics (for checking)."""
    T, B, M = val_seq.shape
    H = params["w_hh"].shape[0]
    h = jnp.zeros((B, H), jnp.float32)
    o_prev = jnp.zeros((B, M), jnp.float32)
    outs = []
    for t in range(T - 1):
        x = val_seq[t]
        x = jnp.where(jnp.isnan(x), o_prev, x)     # t=0: fill with 0; else with o_{t-1}
        pre = (x * i_mask) @ params["w_ih"] + (h * r_mask) @ params["w_hh"] \
              + params["b_ih"] + params["b_hh"]
        h = jnp.tanh(pre)
        o = h @ params["w_out"] + params["b_out"]
        outs.append(o)
        o_prev = o
    return jnp.stack(outs)


if __name__ == "__main__":
    # Small shapes implied by the module: seq=8, batch=4, nb_measures=8, h_size=32
    T, B, M, H = 8, 4, 8, 32

    key = jax.random.PRNGKey(0)
    k_x, k_nan, k1, k2, k3, k4, k5, k6 = jax.random.split(key, 8)

    # Deterministic synthetic parameters (stand-ins for celltype + hid2out weights),
    # stored (in_features, out_features) so the kernel computes x @ W.
    params = {
        "w_ih":  0.1 * jax.random.normal(k1, (M, H), jnp.float32),
        "w_hh":  0.1 * jax.random.normal(k2, (H, H), jnp.float32),
        "b_ih":  0.1 * jax.random.normal(k3, (1, H), jnp.float32),
        "b_hh":  0.1 * jax.random.normal(k4, (1, H), jnp.float32),
        "w_out": 0.1 * jax.random.normal(k5, (H, M), jnp.float32),
        "b_out": 0.1 * jax.random.normal(k6, (1, M), jnp.float32),
    }

    # Pad + fuse the weights ONCE (cached across calls).
    padded = prepare_padded_params(params)

    # Eval-mode dropout masks are all ones => kernel skips them (static flag);
    # the reference still applies the (no-op) masks for fidelity.
    i_mask = jnp.ones((B, M), jnp.float32)
    r_mask = jnp.ones((B, H), jnp.float32)

    # Input sequence with missing values (NaNs) to be interpolated by the model.
    val_seq = jax.random.normal(k_x, (T, B, M), jnp.float32)
    nan_mask = jax.random.bernoulli(k_nan, 0.25, (T, B, M))
    val_seq = jnp.where(nan_mask, jnp.nan, val_seq)

    inaux = jnp.zeros((T, B, 1), jnp.float32)  # unused by the base-class forward

    out = rnn_model_interp_forward(val_seq, inaux, padded)   # eval mode: no masks
    out = jax.block_until_ready(out)

    ref = _reference_forward(val_seq, params, i_mask, r_mask)
    assert out.shape == (T - 1, B, M), out.shape
    assert jnp.allclose(out, ref, atol=1e-4, rtol=1e-4), "mismatch vs pure-JAX reference"

    print("KERNEL_OK")
</pallas_src>

<mosaic_0001>
module attributes {stable_mosaic.version = 11 : i64} {
  func.func @kernel(%arg0: memref<8x8x128xf32, #tpu.memory_space<vmem>>, %arg1: memref<256x128xf32, #tpu.memory_space<vmem>>, %arg2: memref<1x128xf32, #tpu.memory_space<vmem>>, %arg3: memref<128x128xf32, #tpu.memory_space<vmem>>, %arg4: memref<1x128xf32, #tpu.memory_space<vmem>>, %arg5: memref<7x8x128xf32, #tpu.memory_space<vmem>>) attributes {dimension_semantics = [], scalar_prefetch = 0 : i64, scratch_operands = 0 : i64, tpu.core_type = #tpu.core_type<tc>} {
    %c0 = arith.constant 0 : index
    %c0_0 = arith.constant 0 : index
    %0 = vector.load %arg2[%c0, %c0_0] : memref<1x128xf32, #tpu.memory_space<vmem>>, vector<1x128xf32>
    %1 = vector.shape_cast %0 : vector<1x128xf32> to vector<1x128xf32>
    %2 = vector.broadcast %1 : vector<1x128xf32> to vector<8x128xf32>
    %c0_1 = arith.constant 0 : index
    %c0_2 = arith.constant 0 : index
    %3 = vector.load %arg4[%c0_1, %c0_2] : memref<1x128xf32, #tpu.memory_space<vmem>>, vector<1x128xf32>
    %4 = vector.shape_cast %3 : vector<1x128xf32> to vector<1x128xf32>
    %5 = vector.broadcast %4 : vector<1x128xf32> to vector<8x128xf32>
    %cst = arith.constant 0.000000e+00 : f32
    %6 = vector.broadcast %cst : f32 to vector<8x128xf32>
    %cst_3 = arith.constant 0.000000e+00 : f32
    %7 = vector.broadcast %cst_3 : f32 to vector<8x128xf32>
    %c0_4 = arith.constant 0 : index
    %c0_5 = arith.constant 0 : index
    %c0_6 = arith.constant 0 : index
    %8 = vector.load %arg0[%c0_4, %c0_5, %c0_6] : memref<8x8x128xf32, #tpu.memory_space<vmem>>, vector<1x8x128xf32>
    %9 = vector.shape_cast %8 : vector<1x8x128xf32> to vector<8x128xf32>
    %10 = arith.cmpf one, %9, %9 : vector<8x128xf32>
    %11 = arith.select %10, %7, %9 : vector<8x128xi1>, vector<8x128xf32>
    %12 = tpu.concatenate %11, %6 in 1 : vector<8x128xf32>, vector<8x128xf32> -> vector<8x256xf32>
    %c0_7 = arith.constant 0 : index
    %c0_8 = arith.constant 0 : index
    %13 = vector.load %arg1[%c0_7, %c0_8] : memref<256x128xf32, #tpu.memory_space<vmem>>, vector<256x128xf32>
    %cst_9 = arith.constant dense<0.000000e+00> : vector<8x128xf32>
    %14 = tpu.matmul %12, %13, %cst_9 {dimension_numbers = #tpu.dot_dimension_numbers<[1], [0], [0], [1], [0, 0, 1, 1], [], []>} : vector<8x256xf32>, vector<256x128xf32>, vector<8x128xf32> -> vector<8x128xf32>
    %15 = arith.addf %14, %2 : vector<8x128xf32>
    %16 = math.tanh %15 : vector<8x128xf32>
    %c0_10 = arith.constant 0 : index
    %c0_11 = arith.constant 0 : index
    %17 = vector.load %arg3[%c0_10, %c0_11] : memref<128x128xf32, #tpu.memory_space<vmem>>, vector<128x128xf32>
    %cst_12 = arith.constant dense<0.000000e+00> : vector<8x128xf32>
    %18 = tpu.matmul %16, %17, %cst_12 {dimension_numbers = #tpu.dot_dimension_numbers<[1], [0], [0], [1], [0, 0, 1, 1], [], []>} : vector<8x128xf32>, vector<128x128xf32>, vector<8x128xf32> -> vector<8x128xf32>
    %19 = arith.addf %18, %5 : vector<8x128xf32>
    %c0_13 = arith.constant 0 : index
    %c0_14 = arith.constant 0 : index
    %c0_15 = arith.constant 0 : index
    %20 = vector.load %arg5[%c0_13, %c0_14, %c0_15] : memref<7x8x128xf32, #tpu.memory_space<vmem>>, vector<1x8x128xf32>
    %21 = vector.shape_cast %20 : vector<1x8x128xf32> to vector<8x128xf32>
    %22 = vector.shape_cast %19 : vector<8x128xf32> to vector<1x8x128xf32>
    tpu.vector_store %arg5[%c0_13, %c0_14, %c0_15], %22 {strides = array<i32>} : memref<7x8x128xf32, #tpu.memory_space<vmem>>, vector<1x8x128xf32>,
    %c1 = arith.constant 1 : index
    %c0_16 = arith.constant 0 : index
    %c0_17 = arith.constant 0 : index
    %23 = vector.load %arg0[%c1, %c0_16, %c0_17] : memref<8x8x128xf32, #tpu.memory_space<vmem>>, vector<1x8x128xf32>
    %24 = vector.shape_cast %23 : vector<1x8x128xf32> to vector<8x128xf32>
    %25 = arith.cmpf one, %24, %24 : vector<8x128xf32>
    %26 = arith.select %25, %19, %24 : vector<8x128xi1>, vector<8x128xf32>
    %27 = tpu.concatenate %26, %16 in 1 : vector<8x128xf32>, vector<8x128xf32> -> vector<8x256xf32>
    %c0_18 = arith.constant 0 : index
    %c0_19 = arith.constant 0 : index
    %28 = vector.load %arg1[%c0_18, %c0_19] : memref<256x128xf32, #tpu.memory_space<vmem>>, vector<256x128xf32>
    %cst_20 = arith.constant dense<0.000000e+00> : vector<8x128xf32>
    %29 = tpu.matmul %27, %28, %cst_20 {dimension_numbers = #tpu.dot_dimension_numbers<[1], [0], [0], [1], [0, 0, 1, 1], [], []>} : vector<8x256xf32>, vector<256x128xf32>, vector<8x128xf32> -> vector<8x128xf32>
    %30 = arith.addf %29, %2 : vector<8x128xf32>
    %31 = math.tanh %30 : vector<8x128xf32>
    %c0_21 = arith.constant 0 : index
    %c0_22 = arith.constant 0 : index
    %32 = vector.load %arg3[%c0_21, %c0_22] : memref<128x128xf32, #tpu.memory_space<vmem>>, vector<128x128xf32>
    %cst_23 = arith.constant dense<0.000000e+00> : vector<8x128xf32>
    %33 = tpu.matmul %31, %32, %cst_23 {dimension_numbers = #tpu.dot_dimension_numbers<[1], [0], [0], [1], [0, 0, 1, 1], [], []>} : vector<8x128xf32>, vector<128x128xf32>, vector<8x128xf32> -> vector<8x128xf32>
    %34 = arith.addf %33, %5 : vector<8x128xf32>
    %c1_24 = arith.constant 1 : index
    %c0_25 = arith.constant 0 : index
    %c0_26 = arith.constant 0 : index
    %35 = vector.load %arg5[%c1_24, %c0_25, %c0_26] : memref<7x8x128xf32, #tpu.memory_space<vmem>>, vector<1x8x128xf32>
    %36 = vector.shape_cast %35 : vector<1x8x128xf32> to vector<8x128xf32>
    %37 = vector.shape_cast %34 : vector<8x128xf32> to vector<1x8x128xf32>
    tpu.vector_store %arg5[%c1_24, %c0_25, %c0_26], %37 {strides = array<i32>} : memref<7x8x128xf32, #tpu.memory_space<vmem>>, vector<1x8x128xf32>,
    %c2 = arith.constant 2 : index
    %c0_27 = arith.constant 0 : index
    %c0_28 = arith.constant 0 : index
    %38 = vector.load %arg0[%c2, %c0_27, %c0_28] : memref<8x8x128xf32, #tpu.memory_space<vmem>>, vector<1x8x128xf32>
    %39 = vector.shape_cast %38 : vector<1x8x128xf32> to vector<8x128xf32>
    %40 = arith.cmpf one, %39, %39 : vector<8x128xf32>
    %41 = arith.select %40, %34, %39 : vector<8x128xi1>, vector<8x128xf32>
    %42 = tpu.concatenate %41, %31 in 1 : vector<8x128xf32>, vector<8x128xf32> -> vector<8x256xf32>
    %c0_29 = arith.constant 0 : index
    %c0_30 = arith.constant 0 : index
    %43 = vector.load %arg1[%c0_29, %c0_30] : memref<256x128xf32, #tpu.memory_space<vmem>>, vector<256x128xf32>
    %cst_31 = arith.constant dense<0.000000e+00> : vector<8x128xf32>
    %44 = tpu.matmul %42, %43, %cst_31 {dimension_numbers = #tpu.dot_dimension_numbers<[1], [0], [0], [1], [0, 0, 1, 1], [], []>} : vector<8x256xf32>, vector<256x128xf32>, vector<8x128xf32> -> vector<8x128xf32>
    %45 = arith.addf %44, %2 : vector<8x128xf32>
    %46 = math.tanh %45 : vector<8x128xf32>
    %c0_32 = arith.constant 0 : index
    %c0_33 = arith.constant 0 : index
    %47 = vector.load %arg3[%c0_32, %c0_33] : memref<128x128xf32, #tpu.memory_space<vmem>>, vector<128x128xf32>
    %cst_34 = arith.constant dense<0.000000e+00> : vector<8x128xf32>
    %48 = tpu.matmul %46, %47, %cst_34 {dimension_numbers = #tpu.dot_dimension_numbers<[1], [0], [0], [1], [0, 0, 1, 1], [], []>} : vector<8x128xf32>, vector<128x128xf32>, vector<8x128xf32> -> vector<8x128xf32>
    %49 = arith.addf %48, %5 : vector<8x128xf32>
    %c2_35 = arith.constant 2 : index
    %c0_36 = arith.constant 0 : index
    %c0_37 = arith.constant 0 : index
    %50 = vector.load %arg5[%c2_35, %c0_36, %c0_37] : memref<7x8x128xf32, #tpu.memory_space<vmem>>, vector<1x8x128xf32>
    %51 = vector.shape_cast %50 : vector<1x8x128xf32> to vector<8x128xf32>
    %52 = vector.shape_cast %49 : vector<8x128xf32> to vector<1x8x128xf32>
    tpu.vector_store %arg5[%c2_35, %c0_36, %c0_37], %52 {strides = array<i32>} : memref<7x8x128xf32, #tpu.memory_space<vmem>>, vector<1x8x128xf32>,
    %c3 = arith.constant 3 : index
    %c0_38 = arith.constant 0 : index
    %c0_39 = arith.constant 0 : index
    %53 = vector.load %arg0[%c3, %c0_38, %c0_39] : memref<8x8x128xf32, #tpu.memory_space<vmem>>, vector<1x8x128xf32>
    %54 = vector.shape_cast %53 : vector<1x8x128xf32> to vector<8x128xf32>
    %55 = arith.cmpf one, %54, %54 : vector<8x128xf32>
    %56 = arith.select %55, %49, %54 : vector<8x128xi1>, vector<8x128xf32>
    %57 = tpu.concatenate %56, %46 in 1 : vector<8x128xf32>, vector<8x128xf32> -> vector<8x256xf32>
    %c0_40 = arith.constant 0 : index
    %c0_41 = arith.constant 0 : index
    %58 = vector.load %arg1[%c0_40, %c0_41] : memref<256x128xf32, #tpu.memory_space<vmem>>, vector<256x128xf32>
    %cst_42 = arith.constant dense<0.000000e+00> : vector<8x128xf32>
    %59 = tpu.matmul %57, %58, %cst_42 {dimension_numbers = #tpu.dot_dimension_numbers<[1], [0], [0], [1], [0, 0, 1, 1], [], []>} : vector<8x256xf32>, vector<256x128xf32>, vector<8x128xf32> -> vector<8x128xf32>
    %60 = arith.addf %59, %2 : vector<8x128xf32>
    %61 = math.tanh %60 : vector<8x128xf32>
    %c0_43 = arith.constant 0 : index
    %c0_44 = arith.constant 0 : index
    %62 = vector.load %arg3[%c0_43, %c0_44] : memref<128x128xf32, #tpu.memory_space<vmem>>, vector<128x128xf32>
    %cst_45 = arith.constant dense<0.000000e+00> : vector<8x128xf32>
    %63 = tpu.matmul %61, %62, %cst_45 {dimension_numbers = #tpu.dot_dimension_numbers<[1], [0], [0], [1], [0, 0, 1, 1], [], []>} : vector<8x128xf32>, vector<128x128xf32>, vector<8x128xf32> -> vector<8x128xf32>
    %64 = arith.addf %63, %5 : vector<8x128xf32>
    %c3_46 = arith.constant 3 : index
    %c0_47 = arith.constant 0 : index
    %c0_48 = arith.constant 0 : index
    %65 = vector.load %arg5[%c3_46, %c0_47, %c0_48] : memref<7x8x128xf32, #tpu.memory_space<vmem>>, vector<1x8x128xf32>
    %66 = vector.shape_cast %65 : vector<1x8x128xf32> to vector<8x128xf32>
    %67 = vector.shape_cast %64 : vector<8x128xf32> to vector<1x8x128xf32>
    tpu.vector_store %arg5[%c3_46, %c0_47, %c0_48], %67 {strides = array<i32>} : memref<7x8x128xf32, #tpu.memory_space<vmem>>, vector<1x8x128xf32>,
    %c4 = arith.constant 4 : index
    %c0_49 = arith.constant 0 : index
    %c0_50 = arith.constant 0 : index
    %68 = vector.load %arg0[%c4, %c0_49, %c0_50] : memref<8x8x128xf32, #tpu.memory_space<vmem>>, vector<1x8x128xf32>
    %69 = vector.shape_cast %68 : vector<1x8x128xf32> to vector<8x128xf32>
    %70 = arith.cmpf one, %69, %69 : vector<8x128xf32>
    %71 = arith.select %70, %64, %69 : vector<8x128xi1>, vector<8x128xf32>
    %72 = tpu.concatenate %71, %61 in 1 : vector<8x128xf32>, vector<8x128xf32> -> vector<8x256xf32>
    %c0_51 = arith.constant 0 : index
    %c0_52 = arith.constant 0 : index
    %73 = vector.load %arg1[%c0_51, %c0_52] : memref<256x128xf32, #tpu.memory_space<vmem>>, vector<256x128xf32>
    %cst_53 = arith.constant dense<0.000000e+00> : vector<8x128xf32>
    %74 = tpu.matmul %72, %73, %cst_53 {dimension_numbers = #tpu.dot_dimension_numbers<[1], [0], [0], [1], [0, 0, 1, 1], [], []>} : vector<8x256xf32>, vector<256x128xf32>, vector<8x128xf32> -> vector<8x128xf32>
    %75 = arith.addf %74, %2 : vector<8x128xf32>
    %76 = math.tanh %75 : vector<8x128xf32>
    %c0_54 = arith.constant 0 : index
    %c0_55 = arith.constant 0 : index
    %77 = vector.load %arg3[%c0_54, %c0_55] : memref<128x128xf32, #tpu.memory_space<vmem>>, vector<128x128xf32>
    %cst_56 = arith.constant dense<0.000000e+00> : vector<8x128xf32>
    %78 = tpu.matmul %76, %77, %cst_56 {dimension_numbers = #tpu.dot_dimension_numbers<[1], [0], [0], [1], [0, 0, 1, 1], [], []>} : vector<8x128xf32>, vector<128x128xf32>, vector<8x128xf32> -> vector<8x128xf32>
    %79 = arith.addf %78, %5 : vector<8x128xf32>
    %c4_57 = arith.constant 4 : index
    %c0_58 = arith.constant 0 : index
    %c0_59 = arith.constant 0 : index
    %80 = vector.load %arg5[%c4_57, %c0_58, %c0_59] : memref<7x8x128xf32, #tpu.memory_space<vmem>>, vector<1x8x128xf32>
    %81 = vector.shape_cast %80 : vector<1x8x128xf32> to vector<8x128xf32>
    %82 = vector.shape_cast %79 : vector<8x128xf32> to vector<1x8x128xf32>
    tpu.vector_store %arg5[%c4_57, %c0_58, %c0_59], %82 {strides = array<i32>} : memref<7x8x128xf32, #tpu.memory_space<vmem>>, vector<1x8x128xf32>,
    %c5 = arith.constant 5 : index
    %c0_60 = arith.constant 0 : index
    %c0_61 = arith.constant 0 : index
    %83 = vector.load %arg0[%c5, %c0_60, %c0_61] : memref<8x8x128xf32, #tpu.memory_space<vmem>>, vector<1x8x128xf32>
    %84 = vector.shape_cast %83 : vector<1x8x128xf32> to vector<8x128xf32>
    %85 = arith.cmpf one, %84, %84 : vector<8x128xf32>
    %86 = arith.select %85, %79, %84 : vector<8x128xi1>, vector<8x128xf32>
    %87 = tpu.concatenate %86, %76 in 1 : vector<8x128xf32>, vector<8x128xf32> -> vector<8x256xf32>
    %c0_62 = arith.constant 0 : index
    %c0_63 = arith.constant 0 : index
    %88 = vector.load %arg1[%c0_62, %c0_63] : memref<256x128xf32, #tpu.memory_space<vmem>>, vector<256x128xf32>
    %cst_64 = arith.constant dense<0.000000e+00> : vector<8x128xf32>
    %89 = tpu.matmul %87, %88, %cst_64 {dimension_numbers = #tpu.dot_dimension_numbers<[1], [0], [0], [1], [0, 0, 1, 1], [], []>} : vector<8x256xf32>, vector<256x128xf32>, vector<8x128xf32> -> vector<8x128xf32>
    %90 = arith.addf %89, %2 : vector<8x128xf32>
    %91 = math.tanh %90 : vector<8x128xf32>
    %c0_65 = arith.constant 0 : index
    %c0_66 = arith.constant 0 : index
    %92 = vector.load %arg3[%c0_65, %c0_66] : memref<128x128xf32, #tpu.memory_space<vmem>>, vector<128x128xf32>
    %cst_67 = arith.constant dense<0.000000e+00> : vector<8x128xf32>
    %93 = tpu.matmul %91, %92, %cst_67 {dimension_numbers = #tpu.dot_dimension_numbers<[1], [0], [0], [1], [0, 0, 1, 1], [], []>} : vector<8x128xf32>, vector<128x128xf32>, vector<8x128xf32> -> vector<8x128xf32>
    %94 = arith.addf %93, %5 : vector<8x128xf32>
    %c5_68 = arith.constant 5 : index
    %c0_69 = arith.constant 0 : index
    %c0_70 = arith.constant 0 : index
    %95 = vector.load %arg5[%c5_68, %c0_69, %c0_70] : memref<7x8x128xf32, #tpu.memory_space<vmem>>, vector<1x8x128xf32>
    %96 = vector.shape_cast %95 : vector<1x8x128xf32> to vector<8x128xf32>
    %97 = vector.shape_cast %94 : vector<8x128xf32> to vector<1x8x128xf32>
    tpu.vector_store %arg5[%c5_68, %c0_69, %c0_70], %97 {strides = array<i32>} : memref<7x8x128xf32, #tpu.memory_space<vmem>>, vector<1x8x128xf32>,
    %c6 = arith.constant 6 : index
    %c0_71 = arith.constant 0 : index
    %c0_72 = arith.constant 0 : index
    %98 = vector.load %arg0[%c6, %c0_71, %c0_72] : memref<8x8x128xf32, #tpu.memory_space<vmem>>, vector<1x8x128xf32>
    %99 = vector.shape_cast %98 : vector<1x8x128xf32> to vector<8x128xf32>
    %100 = arith.cmpf one, %99, %99 : vector<8x128xf32>
    %101 = arith.select %100, %94, %99 : vector<8x128xi1>, vector<8x128xf32>
    %102 = tpu.concatenate %101, %91 in 1 : vector<8x128xf32>, vector<8x128xf32> -> vector<8x256xf32>
    %c0_73 = arith.constant 0 : index
    %c0_74 = arith.constant 0 : index
    %103 = vector.load %arg1[%c0_73, %c0_74] : memref<256x128xf32, #tpu.memory_space<vmem>>, vector<256x128xf32>
    %cst_75 = arith.constant dense<0.000000e+00> : vector<8x128xf32>
    %104 = tpu.matmul %102, %103, %cst_75 {dimension_numbers = #tpu.dot_dimension_numbers<[1], [0], [0], [1], [0, 0, 1, 1], [], []>} : vector<8x256xf32>, vector<256x128xf32>, vector<8x128xf32> -> vector<8x128xf32>
    %105 = arith.addf %104, %2 : vector<8x128xf32>
    %106 = math.tanh %105 : vector<8x128xf32>
    %c0_76 = arith.constant 0 : index
    %c0_77 = arith.constant 0 : index
    %107 = vector.load %arg3[%c0_76, %c0_77] : memref<128x128xf32, #tpu.memory_space<vmem>>, vector<128x128xf32>
    %cst_78 = arith.constant dense<0.000000e+00> : vector<8x128xf32>
    %108 = tpu.matmul %106, %107, %cst_78 {dimension_numbers = #tpu.dot_dimension_numbers<[1], [0], [0], [1], [0, 0, 1, 1], [], []>} : vector<8x128xf32>, vector<128x128xf32>, vector<8x128xf32> -> vector<8x128xf32>
    %109 = arith.addf %108, %5 : vector<8x128xf32>
    %c6_79 = arith.constant 6 : index
    %c0_80 = arith.constant 0 : index
    %c0_81 = arith.constant 0 : index
    %110 = vector.load %arg5[%c6_79, %c0_80, %c0_81] : memref<7x8x128xf32, #tpu.memory_space<vmem>>, vector<1x8x128xf32>
    %111 = vector.shape_cast %110 : vector<1x8x128xf32> to vector<8x128xf32>
    %112 = vector.shape_cast %109 : vector<8x128xf32> to vector<1x8x128xf32>
    tpu.vector_store %arg5[%c6_79, %c0_80, %c0_81], %112 {strides = array<i32>} : memref<7x8x128xf32, #tpu.memory_space<vmem>>, vector<1x8x128xf32>,
    return
  }
}

</mosaic_0001>

<bundles_post_ra>
// kernel: tpu_custom_call.1
= control target key start
LH: loop header
LB: loop body
LE: loop exit
PB: predicated region body
PF: predicated region fallthrough
CT: control target
= control target key end

     0   :  { %10 = vsyncpa [#allocation3], 0  ;;  %s1511_s0 = inlined_call_operand.hbm [shape: f32[8,8,128], index: 0, kind: input, shape index: {}]   ;;  %s1512_s1 = inlined_call_operand.hbm [shape: f32[256,128], index: 1, kind: input, shape index: {}]   ;;  %s1513_s2 = inlined_call_operand.vmem [shape: f32[1,128], index: 2, kind: input, shape index: {}]   ;;  %s1514_s3 = inlined_call_operand.hbm [shape: f32[128,128], index: 3, kind: input, shape index: {}]   ;;  %s1515_s4 = inlined_call_operand.vmem [shape: f32[1,128], index: 4, kind: input, shape index: {}]   ;;  %s1516_s5 = inlined_call_operand.hbm [shape: f32[7,8,128], index: 5, kind: output, shape index: {}]  }
   0x1   :  { %11 = vsyncpa [#allocation6], 0 }
   0x2   :  { %12 = vsyncpa [#allocation4], 0  ;;  %s30_s20 = sshll.u32 %s1512_s1, 4  ;;  %s1026_s21 = smov [#allocation5]   ;;  %s31_s20 = int_to_ptr.hbm [resolvable:$true] %s30_s20 }
   0x3   :  { %s32_s22 = sshll.u32 %s1026_s21, 4  ;;  %s17_s25 = sshll.u32 %s1511_s0, 4  ;;  %s33_s22 = int_to_ptr.vmem [resolvable:$true] %s32_s22  ;;  %s18_s25 = int_to_ptr.hbm [resolvable:$true] %s17_s25 }
   0x4   :  { %s1027_s26 = smov 128   ;;  %s1028_s27 = smov 8  }
   0x5   :  { %38 = dma.hbm_to_vmem [thread:$0]  %s31_s20, 4096, %s33_s22, [#allocation6], %s1027_s26, %s1027_s26, %s1028_s27  }
   0x6   :  { %s1029_s28 = smov [#allocation2]   ;;  %s45_s1 = sshll.u32 %s1514_s3, 4  ;;  %s46_s1 = int_to_ptr.hbm [resolvable:$true] %s45_s1 }
   0x7   :  { %s19_s29 = sshll.u32 %s1029_s28, 4  ;;  %s1030_s0 = smov [#allocation7]   ;;  %s20_s29 = int_to_ptr.vmem [resolvable:$true] %s19_s29 }
   0x8   :  { %25 = dma.hbm_to_vmem [thread:$0]  %s18_s25, 1024, %s20_s29, [#allocation3], %s1027_s26, %s1027_s26, %s1028_s27  }
   0x9   :  { %s47_s7 = sshll.u32 %s1030_s0, 4  ;;  %s48_s7 = int_to_ptr.vmem [resolvable:$true] %s47_s7 }
   0xa   :  { %53 = dma.hbm_to_vmem [thread:$0]  %s46_s1, 2048, %s48_s7, [#allocation6], %s1027_s26, %s1027_s26, %s1028_s27  }
   0xb   :  { %1020 = dma.done.wait [#allocation3], 1024  }
   0xc   :  { %1021 = vsyncadd [#allocation3], 4294966272 }
   0xd   :  { %1022 = dma.done.wait [#allocation6], 6144  }
   0xe   :  { %1023 = vsyncadd [#allocation6], 4294961152  ;;  %v1081_v0 = vld [vmem:[#allocation5 + $0x78] sm:$0xff]  ;;  %v1083_v1 = vld [vmem:[#allocation5 + $0x70] sm:$0xff]  ;;  %v1031_v43 = vmov 0.0   ;;  %s885_s13 = sshll.u32 %s1516_s5, 4  ;;  %s886_s13 = int_to_ptr.hbm [resolvable:$true] %s885_s13 }
   0xf   :  { %v1085_v2 = vld [vmem:[#allocation5 + $0xf8] sm:$0xff]  ;;  %111 = vmatpush.msra.mxu0 %v1081_v0  ;;  %v1089_v3 = vld [vmem:[#allocation5 + $0xf0] sm:$0xff]  ;;  %v1091_v4 = vld [vmem:[#allocation5 + $0x68] sm:$0xff]  ;;  %225 = vmatpush.msra.mxu3 %v1081_v0 }
  0x10   :  { %131 = vmatpush.msra.mxu1 %v1085_v2  ;;  %v1093_v5 = vld [vmem:[#allocation5 + $0xe8] sm:$0xff]  ;;  %v1098_v6 = vld [vmem:[#allocation5 + $0x60] sm:$0xff]  ;;  %v1105_v8 = vld [vmem:[#allocation5 + $0x58] sm:$0xff] }
  0x11   :  { %112 = vmatpush.msra.mxu0 %v1083_v1  ;;  %v1100_v7 = vld [vmem:[#allocation5 + $0xe0] sm:$0xff]  ;;  %226 = vmatpush.msra.mxu3 %v1083_v1  ;;  %v1107_v9 = vld [vmem:[#allocation5 + $0xd8] sm:$0xff]  ;;  %v1112_v10 = vld [vmem:[#allocation5 + $0x50] sm:$0xff] }
  0x12   :  { %132 = vmatpush.msra.mxu1 %v1089_v3  ;;  %v1114_v11 = vld [vmem:[#allocation5 + $0xd0] sm:$0xff]  ;;  %v1119_v12 = vld [vmem:[#allocation5 + $0x48] sm:$0xff]  ;;  %v1126_v14 = vld [vmem:[#allocation7 + $0x78] sm:$0xff] }
  0x13   :  { %113 = vmatpush.msra.mxu0 %v1091_v4  ;;  %227 = vmatpush.msra.mxu3 %v1091_v4  ;;  %v1121_v13 = vld [vmem:[#allocation5 + $0xc8] sm:$0xff]  ;;  %v1128_v15 = vld [vmem:[#allocation7 + $0x70] sm:$0xff]  ;;  %v1130_v16 = vld [vmem:[#allocation5 + $0x40] sm:$0xff] }
  0x14   :  { %133 = vmatpush.msra.mxu1 %v1093_v5  ;;  %v1132_v17 = vld [vmem:[#allocation5 + $0xc0] sm:$0xff]  ;;  %168 = vmatpush.msra.mxu2 %v1126_v14  ;;  %v1138_v18 = vld [vmem:[#allocation5 + $0x38] sm:$0xff]  ;;  %v1140_v19 = vld [vmem:[#allocation7 + $0x68] sm:$0xff] }
  0x15   :  { %114 = vmatpush.msra.mxu0 %v1098_v6  ;;  %228 = vmatpush.msra.mxu3 %v1098_v6  ;;  %v1142_v20 = vld [vmem:[#allocation5 + $0xb8] sm:$0xff]  ;;  %v1148_v21 = vld [vmem:[#allocation7 + $0x60] sm:$0xff]  ;;  %v1150_v22 = vld [vmem:[#allocation5 + $0x30] sm:$0xff] }
  0x16   :  { %134 = vmatpush.msra.mxu1 %v1100_v7  ;;  %169 = vmatpush.msra.mxu2 %v1128_v15  ;;  %v1152_v23 = vld [vmem:[#allocation5 + $0xb0] sm:$0xff]  ;;  %v1158_v24 = vld [vmem:[#allocation7 + $0x58] sm:$0xff]  ;;  %v1160_v25 = vld [vmem:[#allocation5 + $0x28] sm:$0xff] }
  0x17   :  { %115 = vmatpush.msra.mxu0 %v1105_v8  ;;  %229 = vmatpush.msra.mxu3 %v1105_v8  ;;  %v1162_v26 = vld [vmem:[#allocation5 + $0xa8] sm:$0xff]  ;;  %v1168_v27 = vld [vmem:[#allocation7 + $0x50] sm:$0xff]  ;;  %v1170_v28 = vld [vmem:[#allocation5 + $0x20] sm:$0xff] }
  0x18   :  { %135 = vmatpush.msra.mxu1 %v1107_v9  ;;  %170 = vmatpush.msra.mxu2 %v1140_v19  ;;  %v1172_v29 = vld [vmem:[#allocation5 + $0xa0] sm:$0xff]  ;;  %v1178_v30 = vld [vmem:[#allocation7 + $0x48] sm:$0xff]  ;;  %v1180_v31 = vld [vmem:[#allocation5 + $0x18] sm:$0xff] }
  0x19   :  { %116 = vmatpush.msra.mxu0 %v1112_v10  ;;  %230 = vmatpush.msra.mxu3 %v1112_v10  ;;  %v1182_v32 = vld [vmem:[#allocation5 + $0x98] sm:$0xff]  ;;  %v76_v33 = vld [vmem:[#allocation2] sm:$0xff]  ;;  %v1190_v35 = vld [vmem:[#allocation5 + $0x10] sm:$0xff] }
  0x1a   :  { %136 = vmatpush.msra.mxu1 %v1114_v11  ;;  %171 = vmatpush.msra.mxu2 %v1148_v21  ;;  %v1188_v34 = vld [vmem:[#allocation7 + $0x40] sm:$0xff]  ;;  %v1192_v36 = vld [vmem:[#allocation5 + $0x90] sm:$0xff]  ;;  %v1198_v37 = vld [vmem:[#allocation7 + $0x38] sm:$0xff]  ;;  %vm77_vm0 = vcmp.ne.f32.partialorder %v76_v33, %v76_v33 }
  0x1b   :  { %117 = vmatpush.msra.mxu0 %v1119_v12  ;;  %231 = vmatpush.msra.mxu3 %v1119_v12  ;;  %v1200_v38 = vld [vmem:[#allocation5 + $0x8] sm:$0xff]  ;;  %v1208_v40 = vld [vmem:[#allocation7 + $0x30] sm:$0xff]  ;;  %v1210_v41 = vld [vmem:[#allocation5] sm:$0xff] }
  0x1c   :  { %137 = vmatpush.msra.mxu1 %v1121_v13  ;;  %172 = vmatpush.msra.mxu2 %v1158_v24  ;;  %v1202_v39 = vld [vmem:[#allocation5 + $0x88] sm:$0xff]  ;;  %v1212_v42 = vld [vmem:[#allocation5 + $0x80] sm:$0xff]  ;;  %vm899_vm1 = vmneg %vm77_vm0 }
  0x1d   :  { %118 = vmatpush.msra.mxu0 %v1130_v16  ;;  %232 = vmatpush.msra.mxu3 %v1130_v16  ;;  %v1275_v44 = vld [vmem:[#allocation7 + $0x28] sm:$0xff]  ;;  %v1279_v45 = vld [vmem:[#allocation7 + $0x20] sm:$0xff]  ;;  %v1284_v46 = vld [vmem:[#allocation7 + $0x18] sm:$0xff] }
  0x1e   :  { %138 = vmatpush.msra.mxu1 %v1132_v17  ;;  %173 = vmatpush.msra.mxu2 %v1168_v27  ;;  %v1288_v47 = vld [vmem:[#allocation7 + $0x10] sm:$0xff]  ;;  %v1291_v48 = vld [vmem:[#allocation7 + $0x8] sm:$0xff]  ;;  %v1296_v49 = vld [vmem:[#allocation7] sm:$0xff] }
  0x1f   :  { %119 = vmatpush.msra.mxu0 %v1138_v18  ;;  %233 = vmatpush.msra.mxu3 %v1138_v18  ;;  %v1325_v50 = vld [vmem:[%s1513_s2] ss:$0 sm:$0xff]  ;;  %v190_v57 = vld [vmem:[#allocation2 + $0x8] sm:$0xff] }
  0x20   :  { %139 = vmatpush.msra.mxu1 %v1142_v20  ;;  %174 = vmatpush.msra.mxu2 %v1178_v30  ;;  %v1378_v56 = vld [vmem:[%s1515_s4] ss:$0 sm:$0xff]  ;;  %vm191_vm2 = vcmp.ne.f32.partialorder %v190_v57, %v190_v57  ;;  %s1032_s4 = smov [#allocation8]  }
  0x21   :  { %120 = vmatpush.msra.mxu0 %v1150_v22  ;;  %234 = vmatpush.msra.mxu3 %v1150_v22  ;;  %s883_s10 = sshll.u32 %s1032_s4, 4  ;;  %s884_s10 = int_to_ptr.vmem [resolvable:$true] %s883_s10 }
  0x22   :  { %140 = vmatpush.msra.mxu1 %v1152_v23  ;;  %175 = vmatpush.msra.mxu2 %v1188_v34 }
  0x23   :  { %121 = vmatpush.msra.mxu0 %v1160_v25  ;;  %235 = vmatpush.msra.mxu3 %v1160_v25 }
  0x24   :  { %141 = vmatpush.msra.mxu1 %v1162_v26  ;;  %176 = vmatpush.msra.mxu2 %v1198_v37 }
  0x25   :  { %122 = vmatpush.msra.mxu0 %v1170_v28  ;;  %236 = vmatpush.msra.mxu3 %v1170_v28 }
  0x26   :  { %142 = vmatpush.msra.mxu1 %v1172_v29  ;;  %177 = vmatpush.msra.mxu2 %v1208_v40 }
  0x27   :  { %123 = vmatpush.msra.mxu0 %v1180_v31  ;;  %237 = vmatpush.msra.mxu3 %v1180_v31 }
  0x28   :  { %143 = vmatpush.msra.mxu1 %v1182_v32  ;;  %178 = vmatpush.msra.mxu2 %v1275_v44 }
  0x29   :  { %124 = vmatpush.msra.mxu0 %v1190_v35  ;;  %238 = vmatpush.msra.mxu3 %v1190_v35 }
  0x2a   :  { %144 = vmatpush.msra.mxu1 %v1192_v36  ;;  %179 = vmatpush.msra.mxu2 %v1279_v45 }
  0x2b   :  { %125 = vmatpush.msra.mxu0 %v1200_v38  ;;  %239 = vmatpush.msra.mxu3 %v1200_v38 }
  0x2c   :  { %145 = vmatpush.msra.mxu1 %v1202_v39  ;;  %180 = vmatpush.msra.mxu2 %v1284_v46 }
  0x2d   :  { %126 = vmatpush.msra.mxu0 %v1210_v41  ;;  %240 = vmatpush.msra.mxu3 %v1210_v41 }
  0x2e   :  { %146 = vmatpush.msra.mxu1 %v1212_v42  ;;  %900 = vmatmul.msk.f32.vlgmr.msra.gmra.mxu0 %vm899_vm1, %v76_v33 }
  0x2f   :  { %147 = vmatmul.f32.vlgmr.msra.gmra.mxu1 %v1031_v43  ;;  %245 = vmatpush.msrb.mxu0 %v1085_v2  ;;  %v665_v43 = vld [vmem:[#allocation5 + $0x60] sm:$0xff] }
  0x30   :  { %282 = vmatpush.msrb.mxu1 %v1126_v14  ;;  %360 = vmatpush.msrb.mxu3 %v1085_v2 }
  0x31   :  { %246 = vmatpush.msrb.mxu0 %v1089_v3  ;;  %181 = vmatpush.msra.mxu2 %v1288_v47 }
  0x32   :  { %283 = vmatpush.msrb.mxu1 %v1128_v15  ;;  %361 = vmatpush.msrb.mxu3 %v1089_v3 }
  0x33   :  { %247 = vmatpush.msrb.mxu0 %v1093_v5  ;;  %182 = vmatpush.msra.mxu2 %v1291_v48 }
  0x34   :  { %284 = vmatpush.msrb.mxu1 %v1140_v19  ;;  %362 = vmatpush.msrb.mxu3 %v1093_v5 }
  0x35   :  { %248 = vmatpush.msrb.mxu0 %v1100_v7  ;;  %183 = vmatpush.msra.mxu2 %v1296_v49 }
  0x36   :  { %285 = vmatpush.msrb.mxu1 %v1148_v21  ;;  %363 = vmatpush.msrb.mxu3 %v1100_v7 }
  0x37   :  { %249 = vmatpush.msrb.mxu0 %v1107_v9  ;;  %340 = vmatpush.msrb.mxu2 %v1081_v0 }
  0x38   :  { %286 = vmatpush.msrb.mxu1 %v1158_v24  ;;  %364 = vmatpush.msrb.mxu3 %v1107_v9 }
  0x39   :  { %250 = vmatpush.msrb.mxu0 %v1114_v11  ;;  %341 = vmatpush.msrb.mxu2 %v1083_v1 }
  0x3a   :  { %287 = vmatpush.msrb.mxu1 %v1168_v27  ;;  %365 = vmatpush.msrb.mxu3 %v1114_v11 }
  0x3b   :  { %251 = vmatpush.msrb.mxu0 %v1121_v13  ;;  %342 = vmatpush.msrb.mxu2 %v1091_v4 }
  0x3c   :  { %288 = vmatpush.msrb.mxu1 %v1178_v30  ;;  %366 = vmatpush.msrb.mxu3 %v1121_v13 }
  0x3d   :  { %252 = vmatpush.msrb.mxu0 %v1132_v17  ;;  %343 = vmatpush.msrb.mxu2 %v1098_v6 }
  0x3e   :  { %289 = vmatpush.msrb.mxu1 %v1188_v34  ;;  %367 = vmatpush.msrb.mxu3 %v1132_v17 }
  0x3f   :  { %253 = vmatpush.msrb.mxu0 %v1142_v20  ;;  %344 = vmatpush.msrb.mxu2 %v1105_v8 }
  0x40   :  { %290 = vmatpush.msrb.mxu1 %v1198_v37  ;;  %368 = vmatpush.msrb.mxu3 %v1142_v20 }
  0x41   :  { %254 = vmatpush.msrb.mxu0 %v1152_v23  ;;  %345 = vmatpush.msrb.mxu2 %v1112_v10 }
  0x42   :  { %291 = vmatpush.msrb.mxu1 %v1208_v40  ;;  %369 = vmatpush.msrb.mxu3 %v1152_v23 }
  0x43   :  { %255 = vmatpush.msrb.mxu0 %v1162_v26  ;;  %346 = vmatpush.msrb.mxu2 %v1119_v12 }
  0x44   :  { %370 = vmatpush.msrb.mxu3 %v1162_v26  ;;  %292 = vmatpush.msrb.mxu1 %v1275_v44 }
  0x45   :  { %256 = vmatpush.msrb.mxu0 %v1172_v29  ;;  %347 = vmatpush.msrb.mxu2 %v1130_v16 }
  0x46   :  { %371 = vmatpush.msrb.mxu3 %v1172_v29  ;;  %293 = vmatpush.msrb.mxu1 %v1279_v45 }
  0x47   :  { %257 = vmatpush.msrb.mxu0 %v1182_v32  ;;  %348 = vmatpush.msrb.mxu2 %v1138_v18 }
  0x48   :  { %372 = vmatpush.msrb.mxu3 %v1182_v32  ;;  %294 = vmatpush.msrb.mxu1 %v1284_v46 }
  0x49   :  { %258 = vmatpush.msrb.mxu0 %v1192_v36  ;;  %349 = vmatpush.msrb.mxu2 %v1150_v22 }
  0x4a   :  { %373 = vmatpush.msrb.mxu3 %v1192_v36  ;;  %295 = vmatpush.msrb.mxu1 %v1288_v47 }
  0x4b   :  { %259 = vmatpush.msrb.mxu0 %v1202_v39  ;;  %350 = vmatpush.msrb.mxu2 %v1160_v25 }
  0x4c   :  { %374 = vmatpush.msrb.mxu3 %v1202_v39  ;;  %296 = vmatpush.msrb.mxu1 %v1291_v48 }
  0x4d   :  { %260 = vmatpush.msrb.mxu0 %v1212_v42  ;;  %351 = vmatpush.msrb.mxu2 %v1170_v28 }
  0x4e   :  { %375 = vmatpush.msrb.mxu3 %v1212_v42  ;;  %297 = vmatpush.msrb.mxu1 %v1296_v49 }
  0x4f   :  { %397 = vmatpush.msra.mxu0 %v1126_v14  ;;  %352 = vmatpush.msrb.mxu2 %v1180_v31 }
  0x50   :  { %455 = vmatpush.msra.mxu1 %v1081_v0 }
  0x51   :  { %398 = vmatpush.msra.mxu0 %v1128_v15  ;;  %353 = vmatpush.msrb.mxu2 %v1190_v35 }
  0x52   :  { %456 = vmatpush.msra.mxu1 %v1083_v1 }
  0x53   :  { %399 = vmatpush.msra.mxu0 %v1140_v19  ;;  %354 = vmatpush.msrb.mxu2 %v1200_v38 }
  0x54   :  { %457 = vmatpush.msra.mxu1 %v1091_v4 }
  0x55   :  { %400 = vmatpush.msra.mxu0 %v1148_v21  ;;  %355 = vmatpush.msrb.mxu2 %v1210_v41 }
  0x56   :  { %458 = vmatpush.msra.mxu1 %v1098_v6 }
  0x57   :  { %401 = vmatpush.msra.mxu0 %v1158_v24 }
  0x58   :  { %459 = vmatpush.msra.mxu1 %v1105_v8 }
  0x59   :  { %402 = vmatpush.msra.mxu0 %v1168_v27 }
  0x5a   :  { %460 = vmatpush.msra.mxu1 %v1112_v10 }
  0x5b   :  { %403 = vmatpush.msra.mxu0 %v1178_v30 }
  0x5c   :  { %461 = vmatpush.msra.mxu1 %v1119_v12 }
  0x5d   :  { %404 = vmatpush.msra.mxu0 %v1188_v34 }
  0x5e   :  { %462 = vmatpush.msra.mxu1 %v1130_v16 }
  0x5f   :  { %405 = vmatpush.msra.mxu0 %v1198_v37 }
  0x60   :  { %463 = vmatpush.msra.mxu1 %v1138_v18 }
  0x61   :  { %406 = vmatpush.msra.mxu0 %v1208_v40 }
  0x62   :  { %464 = vmatpush.msra.mxu1 %v1150_v22 }
  0x63   :  { %407 = vmatpush.msra.mxu0 %v1275_v44 }
  0x64   :  { %465 = vmatpush.msra.mxu1 %v1160_v25 }
  0x65   :  { %408 = vmatpush.msra.mxu0 %v1279_v45 }
  0x66   :  { %466 = vmatpush.msra.mxu1 %v1170_v28 }
  0x67   :  { %409 = vmatpush.msra.mxu0 %v1284_v46 }
  0x68   :  { %467 = vmatpush.msra.mxu1 %v1180_v31 }
  0x69   :  { %410 = vmatpush.msra.mxu0 %v1288_v47 }
  0x6a   :  { %468 = vmatpush.msra.mxu1 %v1190_v35 }
  0x6b   :  { %411 = vmatpush.msra.mxu0 %v1291_v48 }
  0x6c   :  { %469 = vmatpush.msra.mxu1 %v1200_v38 }
  0x6d   :  { %412 = vmatpush.msra.mxu0 %v1296_v49 }
  0x6e   :  { %470 = vmatpush.msra.mxu1 %v1210_v41 }
  0xab   :  { %v128_v51 = vpop.f32.mrf.mxu0 }
  0xac   :  { %v148_v52 = vpop.f32.mrf.mxu1  ;;  %v129_v53 = vadd.f32 %v1325_v50, %v128_v51  ;;  %v658_v51 = vld [vmem:[#allocation5 + $0x28] sm:$0xff] }
  0xae   :  { %v149_v54 = vadd.f32 %v148_v52, %v129_v53 }
  0xb0   :  { %910 = vtanh.f32 %v149_v54 }
  0xb6   :  { %v911_v55 = vpop.eup %910 }
  0xb7   :  { %184 = vmatmul.f32.vlgmr.msra.gmra.mxu2 %v911_v55  ;;  %261 = vmatmul.f32.vlgmr.msrb.gmra.mxu0 %v911_v55 }
  0xb8   :  { %475 = vmatpush.msra.mxu2 %v1085_v2  ;;  %570 = vmatpush.msrb.mxu0 %v1081_v0 }
  0xba   :  { %476 = vmatpush.msra.mxu2 %v1089_v3  ;;  %571 = vmatpush.msrb.mxu0 %v1083_v1 }
  0xbc   :  { %477 = vmatpush.msra.mxu2 %v1093_v5  ;;  %572 = vmatpush.msrb.mxu0 %v1091_v4 }
  0xbe   :  { %478 = vmatpush.msra.mxu2 %v1100_v7  ;;  %573 = vmatpush.msrb.mxu0 %v1098_v6 }
  0xc0   :  { %479 = vmatpush.msra.mxu2 %v1107_v9  ;;  %574 = vmatpush.msrb.mxu0 %v1105_v8 }
  0xc2   :  { %480 = vmatpush.msra.mxu2 %v1114_v11  ;;  %575 = vmatpush.msrb.mxu0 %v1112_v10 }
  0xc4   :  { %481 = vmatpush.msra.mxu2 %v1121_v13  ;;  %576 = vmatpush.msrb.mxu0 %v1119_v12 }
  0xc6   :  { %482 = vmatpush.msra.mxu2 %v1132_v17  ;;  %577 = vmatpush.msrb.mxu0 %v1130_v16 }
  0xc8   :  { %483 = vmatpush.msra.mxu2 %v1142_v20  ;;  %578 = vmatpush.msrb.mxu0 %v1138_v18 }
  0xca   :  { %484 = vmatpush.msra.mxu2 %v1152_v23  ;;  %579 = vmatpush.msrb.mxu0 %v1150_v22  ;;  %v1439_v22 = vld [vmem:[#allocation5 + $0xe8] sm:$0xff] }
  0xcc   :  { %485 = vmatpush.msra.mxu2 %v1162_v26  ;;  %580 = vmatpush.msrb.mxu0 %v1160_v25  ;;  %v1448_v25 = vld [vmem:[#allocation5 + $0xd0] sm:$0xff] }
  0xce   :  { %486 = vmatpush.msra.mxu2 %v1172_v29  ;;  %581 = vmatpush.msrb.mxu0 %v1170_v28  ;;  %v1457_v28 = vld [vmem:[#allocation5 + $0xb8] sm:$0xff] }
  0xd0   :  { %487 = vmatpush.msra.mxu2 %v1182_v32  ;;  %582 = vmatpush.msrb.mxu0 %v1180_v31 }
  0xd2   :  { %488 = vmatpush.msra.mxu2 %v1192_v36  ;;  %583 = vmatpush.msrb.mxu0 %v1190_v35  ;;  %v1468_v35 = vld [vmem:[#allocation5 + $0xa0] sm:$0xff] }
  0xd4   :  { %489 = vmatpush.msra.mxu2 %v1202_v39  ;;  %584 = vmatpush.msrb.mxu0 %v1200_v38  ;;  %v1476_v38 = vld [vmem:[#allocation5 + $0x88] sm:$0xff] }
  0xd6   :  { %490 = vmatpush.msra.mxu2 %v1212_v42  ;;  %585 = vmatpush.msrb.mxu0 %v1210_v41  ;;  %v667_v41 = vld [vmem:[#allocation5 + $0x70] sm:$0xff] }
 0x134   :  { %v262_v63 = vpop.f32.mrf.mxu0 }
 0x13a   :  { %v185_v58 = vpop.f32.mrf.mxu2 }
 0x13b   :  { %v186_v59 = vadd.f32 %v1378_v56, %v185_v58  ;;  %v657_v58 = vld [vmem:[#allocation5 + $0x20] sm:$0xff] }
 0x13d   :  { %188 = vst [vmem:[#allocation8] sm:$0xff] %v186_v59  ;;  %v192_v60 = vsel %vm191_vm2, %v186_v59, %v190_v57  ;;  %v656_v59 = vld [vmem:[#allocation5 + $0x18] sm:$0xff] }
 0x13e   :  { %241 = vmatmul.f32.vlgmr.msra.gmra.mxu3 %v192_v60  ;;  %v655_v60 = vld [vmem:[#allocation5 + $0x10] sm:$0xff] }
 0x13f   :  { %512 = vmatpush.msra.mxu3 %v1126_v14 }
 0x141   :  { %513 = vmatpush.msra.mxu3 %v1128_v15 }
 0x143   :  { %514 = vmatpush.msra.mxu3 %v1140_v19 }
 0x145   :  { %515 = vmatpush.msra.mxu3 %v1148_v21 }
 0x147   :  { %516 = vmatpush.msra.mxu3 %v1158_v24 }
 0x149   :  { %517 = vmatpush.msra.mxu3 %v1168_v27 }
 0x14b   :  { %518 = vmatpush.msra.mxu3 %v1178_v30 }
 0x14d   :  { %519 = vmatpush.msra.mxu3 %v1188_v34 }
 0x14f   :  { %520 = vmatpush.msra.mxu3 %v1198_v37 }
 0x151   :  { %521 = vmatpush.msra.mxu3 %v1208_v40 }
 0x153   :  { %522 = vmatpush.msra.mxu3 %v1275_v44 }
 0x155   :  { %523 = vmatpush.msra.mxu3 %v1279_v45 }
 0x157   :  { %524 = vmatpush.msra.mxu3 %v1284_v46 }
 0x159   :  { %525 = vmatpush.msra.mxu3 %v1288_v47 }
 0x15b   :  { %526 = vmatpush.msra.mxu3 %v1291_v48 }
 0x15d   :  { %527 = vmatpush.msra.mxu3 %v1296_v49 }
 0x1c1   :  { %v242_v61 = vpop.f32.mrf.mxu3 }
 0x1c2   :  { %v243_v62 = vadd.f32 %v1325_v50, %v242_v61  ;;  %v654_v61 = vld [vmem:[#allocation5 + $0x8] sm:$0xff] }
 0x1c4   :  { %v263_v0 = vadd.f32 %v262_v63, %v243_v62  ;;  %v653_v62 = vld [vmem:[#allocation5] sm:$0xff]  ;;  %v741_v63 = vld [vmem:[#allocation7 + $0x78] sm:$0xff] }
 0x1c6   :  { %912 = vtanh.f32 %v263_v0  ;;  %v740_v0 = vld [vmem:[#allocation7 + $0x70] sm:$0xff] }
 0x1cc   :  { %v913_v1 = vpop.eup %912 }
 0x1cd   :  { %298 = vmatmul.f32.vlgmr.msrb.gmra.mxu1 %v913_v1  ;;  %376 = vmatmul.f32.vlgmr.msrb.gmra.mxu3 %v913_v1  ;;  %v739_v1 = vld [vmem:[#allocation7 + $0x68] sm:$0xff] }
 0x1ce   :  { %590 = vmatpush.msrb.mxu1 %v1085_v2  ;;  %v305_v2 = vld [vmem:[#allocation2 + $0x10] sm:$0xff] }
 0x1cf   :  { %vm306_vm3 = vcmp.ne.f32.partialorder %v305_v2, %v305_v2 }
 0x1d0   :  { %591 = vmatpush.msrb.mxu1 %v1089_v3 }
 0x1d2   :  { %592 = vmatpush.msrb.mxu1 %v1093_v5 }
 0x1d4   :  { %593 = vmatpush.msrb.mxu1 %v1100_v7 }
 0x1d6   :  { %594 = vmatpush.msrb.mxu1 %v1107_v9 }
 0x1d8   :  { %595 = vmatpush.msrb.mxu1 %v1114_v11  ;;  %v420_v11 = vld [vmem:[#allocation2 + $0x18] sm:$0xff] }
 0x1d9   :  { %vm421_vm4 = vcmp.ne.f32.partialorder %v420_v11, %v420_v11 }
 0x1da   :  { %596 = vmatpush.msrb.mxu1 %v1121_v13 }
 0x1dc   :  { %597 = vmatpush.msrb.mxu1 %v1132_v17 }
 0x1de   :  { %598 = vmatpush.msrb.mxu1 %v1142_v20  ;;  %v1434_v20 = vld [vmem:[#allocation5 + $0xf8] sm:$0xff] }
 0x1e0   :  { %599 = vmatpush.msrb.mxu1 %v1152_v23  ;;  %v1442_v23 = vld [vmem:[#allocation5 + $0xe0] sm:$0xff] }
 0x1e2   :  { %600 = vmatpush.msrb.mxu1 %v1162_v26  ;;  %v1451_v26 = vld [vmem:[#allocation5 + $0xc8] sm:$0xff] }
 0x1e4   :  { %601 = vmatpush.msrb.mxu1 %v1172_v29  ;;  %v1460_v29 = vld [vmem:[#allocation5 + $0xb0] sm:$0xff] }
 0x1e6   :  { %602 = vmatpush.msrb.mxu1 %v1182_v32 }
 0x1e8   :  { %603 = vmatpush.msrb.mxu1 %v1192_v36  ;;  %v1471_v36 = vld [vmem:[#allocation5 + $0x98] sm:$0xff] }
 0x1ea   :  { %604 = vmatpush.msrb.mxu1 %v1202_v39  ;;  %v1479_v39 = vld [vmem:[#allocation5 + $0x80] sm:$0xff] }
 0x1ec   :  { %605 = vmatpush.msrb.mxu1 %v1212_v42  ;;  %v666_v42 = vld [vmem:[#allocation5 + $0x68] sm:$0xff] }
 0x24a   :  { %v299_v3 = vpop.f32.mrf.mxu1 }
 0x24b   :  { %v300_v4 = vadd.f32 %v1378_v56, %v299_v3  ;;  %v737_v3 = vld [vmem:[#allocation7 + $0x58] sm:$0xff] }
 0x24d   :  { %303 = vst [vmem:[#allocation8 + $0x8] sm:$0xff] %v300_v4  ;;  %v307_v5 = vsel %vm306_vm3, %v300_v4, %v305_v2  ;;  %v738_v2 = vld [vmem:[#allocation7 + $0x60] sm:$0xff]  ;;  %v736_v4 = vld [vmem:[#allocation7 + $0x50] sm:$0xff] }
 0x24e   :  { %356 = vmatmul.f32.vlgmr.msrb.gmra.mxu2 %v307_v5  ;;  %v735_v5 = vld [vmem:[#allocation7 + $0x48] sm:$0xff] }
 0x24f   :  { %627 = vmatpush.msrb.mxu2 %v1126_v14 }
 0x250   :  { %v377_v8 = vpop.f32.mrf.mxu3 }
 0x251   :  { %628 = vmatpush.msrb.mxu2 %v1128_v15 }
 0x253   :  { %629 = vmatpush.msrb.mxu2 %v1140_v19 }
 0x255   :  { %630 = vmatpush.msrb.mxu2 %v1148_v21  ;;  %v1436_v21 = vld [vmem:[#allocation5 + $0xf0] sm:$0xff] }
 0x257   :  { %631 = vmatpush.msrb.mxu2 %v1158_v24  ;;  %v1445_v24 = vld [vmem:[#allocation5 + $0xd8] sm:$0xff] }
 0x259   :  { %632 = vmatpush.msrb.mxu2 %v1168_v27  ;;  %v1454_v27 = vld [vmem:[#allocation5 + $0xc0] sm:$0xff] }
 0x25b   :  { %633 = vmatpush.msrb.mxu2 %v1178_v30  ;;  %v535_v30 = vld [vmem:[#allocation2 + $0x20] sm:$0xff] }
 0x25c   :  { %vm536_vm5 = vcmp.ne.f32.partialorder %v535_v30, %v535_v30 }
 0x25d   :  { %634 = vmatpush.msrb.mxu2 %v1188_v34  ;;  %v1465_v34 = vld [vmem:[#allocation5 + $0xa8] sm:$0xff] }
 0x25f   :  { %635 = vmatpush.msrb.mxu2 %v1198_v37  ;;  %v1474_v37 = vld [vmem:[#allocation5 + $0x90] sm:$0xff] }
 0x261   :  { %636 = vmatpush.msrb.mxu2 %v1208_v40  ;;  %v668_v40 = vld [vmem:[#allocation5 + $0x78] sm:$0xff] }
 0x262   :  { %685 = vmatpush.msrb.mxu3 %v668_v40 }
 0x263   :  { %637 = vmatpush.msrb.mxu2 %v1275_v44  ;;  %v664_v44 = vld [vmem:[#allocation5 + $0x58] sm:$0xff] }
 0x264   :  { %686 = vmatpush.msrb.mxu3 %v667_v41 }
 0x265   :  { %638 = vmatpush.msrb.mxu2 %v1279_v45  ;;  %v663_v45 = vld [vmem:[#allocation5 + $0x50] sm:$0xff] }
 0x266   :  { %687 = vmatpush.msrb.mxu3 %v666_v42 }
 0x267   :  { %639 = vmatpush.msrb.mxu2 %v1284_v46  ;;  %v662_v46 = vld [vmem:[#allocation5 + $0x48] sm:$0xff] }
 0x268   :  { %688 = vmatpush.msrb.mxu3 %v665_v43 }
 0x269   :  { %640 = vmatpush.msrb.mxu2 %v1288_v47  ;;  %v661_v47 = vld [vmem:[#allocation5 + $0x40] sm:$0xff] }
 0x26a   :  { %689 = vmatpush.msrb.mxu3 %v664_v44 }
 0x26b   :  { %641 = vmatpush.msrb.mxu2 %v1291_v48  ;;  %v660_v48 = vld [vmem:[#allocation5 + $0x38] sm:$0xff] }
 0x26c   :  { %690 = vmatpush.msrb.mxu3 %v663_v45 }
 0x26d   :  { %642 = vmatpush.msrb.mxu2 %v1296_v49  ;;  %v659_v49 = vld [vmem:[#allocation5 + $0x30] sm:$0xff] }
 0x26e   :  { %691 = vmatpush.msrb.mxu3 %v662_v46 }
 0x270   :  { %692 = vmatpush.msrb.mxu3 %v661_v47 }
 0x272   :  { %693 = vmatpush.msrb.mxu3 %v660_v48 }
 0x274   :  { %694 = vmatpush.msrb.mxu3 %v659_v49 }
 0x276   :  { %695 = vmatpush.msrb.mxu3 %v658_v51 }
 0x278   :  { %696 = vmatpush.msrb.mxu3 %v657_v58 }
 0x27a   :  { %697 = vmatpush.msrb.mxu3 %v656_v59 }
 0x27c   :  { %698 = vmatpush.msrb.mxu3 %v655_v60 }
 0x27e   :  { %699 = vmatpush.msrb.mxu3 %v654_v61 }
 0x280   :  { %700 = vmatpush.msrb.mxu3 %v653_v62 }
 0x2d1   :  { %v357_v6 = vpop.f32.mrf.mxu2 }
 0x2d2   :  { %v358_v7 = vadd.f32 %v1325_v50, %v357_v6  ;;  %v734_v6 = vld [vmem:[#allocation7 + $0x40] sm:$0xff] }
 0x2d4   :  { %v378_v9 = vadd.f32 %v377_v8, %v358_v7  ;;  %v733_v7 = vld [vmem:[#allocation7 + $0x38] sm:$0xff]  ;;  %v732_v8 = vld [vmem:[#allocation7 + $0x30] sm:$0xff] }
 0x2d6   :  { %914 = vtanh.f32 %v378_v9  ;;  %v650_v9 = vld [vmem:[#allocation2 + $0x28] sm:$0xff] }
 0x2d7   :  { %vm651_vm6 = vcmp.ne.f32.partialorder %v650_v9, %v650_v9 }
 0x2dc   :  { %v915_v10 = vpop.eup %914 }
 0x2dd   :  { %413 = vmatmul.f32.vlgmr.msra.gmra.mxu0 %v915_v10  ;;  %491 = vmatmul.f32.vlgmr.msra.gmra.mxu2 %v915_v10 }
 0x2de   :  { %705 = vmatpush.msra.mxu0 %v1434_v20  ;;  %800 = vmatpush.msra.mxu2 %v668_v40 }
 0x2e0   :  { %706 = vmatpush.msra.mxu0 %v1436_v21  ;;  %801 = vmatpush.msra.mxu2 %v667_v41 }
 0x2e2   :  { %707 = vmatpush.msra.mxu0 %v1439_v22  ;;  %802 = vmatpush.msra.mxu2 %v666_v42 }
 0x2e4   :  { %708 = vmatpush.msra.mxu0 %v1442_v23  ;;  %803 = vmatpush.msra.mxu2 %v665_v43 }
 0x2e6   :  { %709 = vmatpush.msra.mxu0 %v1445_v24  ;;  %804 = vmatpush.msra.mxu2 %v664_v44 }
 0x2e8   :  { %710 = vmatpush.msra.mxu0 %v1448_v25  ;;  %805 = vmatpush.msra.mxu2 %v663_v45 }
 0x2ea   :  { %711 = vmatpush.msra.mxu0 %v1451_v26  ;;  %806 = vmatpush.msra.mxu2 %v662_v46 }
 0x2ec   :  { %712 = vmatpush.msra.mxu0 %v1454_v27  ;;  %807 = vmatpush.msra.mxu2 %v661_v47 }
 0x2ee   :  { %713 = vmatpush.msra.mxu0 %v1457_v28  ;;  %808 = vmatpush.msra.mxu2 %v660_v48 }
 0x2f0   :  { %714 = vmatpush.msra.mxu0 %v1460_v29  ;;  %809 = vmatpush.msra.mxu2 %v659_v49 }
 0x2f2   :  { %715 = vmatpush.msra.mxu0 %v1465_v34  ;;  %810 = vmatpush.msra.mxu2 %v658_v51 }
 0x2f4   :  { %716 = vmatpush.msra.mxu0 %v1468_v35  ;;  %811 = vmatpush.msra.mxu2 %v657_v58 }
 0x2f6   :  { %717 = vmatpush.msra.mxu0 %v1471_v36  ;;  %812 = vmatpush.msra.mxu2 %v656_v59 }
 0x2f8   :  { %718 = vmatpush.msra.mxu0 %v1474_v37  ;;  %813 = vmatpush.msra.mxu2 %v655_v60 }
 0x2fa   :  { %719 = vmatpush.msra.mxu0 %v1476_v38  ;;  %814 = vmatpush.msra.mxu2 %v654_v61 }
 0x2fc   :  { %720 = vmatpush.msra.mxu0 %v1479_v39  ;;  %815 = vmatpush.msra.mxu2 %v653_v62 }
 0x35a   :  { %v414_v12 = vpop.f32.mrf.mxu0 }
 0x35b   :  { %v415_v13 = vadd.f32 %v1378_v56, %v414_v12 }
 0x35d   :  { %418 = vst [vmem:[#allocation8 + $0x10] sm:$0xff] %v415_v13  ;;  %v422_v14 = vsel %vm421_vm4, %v415_v13, %v420_v11  ;;  %v731_v13 = vld [vmem:[#allocation7 + $0x28] sm:$0xff] }
 0x35e   :  { %471 = vmatmul.f32.vlgmr.msra.gmra.mxu1 %v422_v14  ;;  %v730_v14 = vld [vmem:[#allocation7 + $0x20] sm:$0xff] }
 0x35f   :  { %742 = vmatpush.msra.mxu1 %v741_v63 }
 0x360   :  { %v492_v17 = vpop.f32.mrf.mxu2 }
 0x361   :  { %743 = vmatpush.msra.mxu1 %v740_v0 }
 0x363   :  { %744 = vmatpush.msra.mxu1 %v739_v1 }
 0x365   :  { %745 = vmatpush.msra.mxu1 %v738_v2 }
 0x367   :  { %746 = vmatpush.msra.mxu1 %v737_v3 }
 0x369   :  { %747 = vmatpush.msra.mxu1 %v736_v4 }
 0x36b   :  { %748 = vmatpush.msra.mxu1 %v735_v5 }
 0x36d   :  { %749 = vmatpush.msra.mxu1 %v734_v6 }
 0x36f   :  { %750 = vmatpush.msra.mxu1 %v733_v7 }
 0x371   :  { %751 = vmatpush.msra.mxu1 %v732_v8 }
 0x373   :  { %752 = vmatpush.msra.mxu1 %v731_v13 }
 0x375   :  { %753 = vmatpush.msra.mxu1 %v730_v14 }
 0x3db   :  { %v472_v15 = vpop.f32.mrf.mxu1 }
 0x3dc   :  { %v473_v16 = vadd.f32 %v1325_v50, %v472_v15  ;;  %v729_v15 = vld [vmem:[#allocation7 + $0x18] sm:$0xff] }
 0x3dd   :  { %754 = vmatpush.msra.mxu1 %v729_v15 }
 0x3de   :  { %v493_v18 = vadd.f32 %v492_v17, %v473_v16  ;;  %v728_v16 = vld [vmem:[#allocation7 + $0x10] sm:$0xff]  ;;  %v727_v17 = vld [vmem:[#allocation7 + $0x8] sm:$0xff] }
 0x3df   :  { %755 = vmatpush.msra.mxu1 %v728_v16 }
 0x3e0   :  { %916 = vtanh.f32 %v493_v18  ;;  %v726_v18 = vld [vmem:[#allocation7] sm:$0xff] }
 0x3e1   :  { %756 = vmatpush.msra.mxu1 %v727_v17 }
 0x3e3   :  { %757 = vmatpush.msra.mxu1 %v726_v18 }
 0x3e6   :  { %v917_v19 = vpop.eup %916 }
 0x3e7   :  { %528 = vmatmul.f32.vlgmr.msra.gmra.mxu3 %v917_v19  ;;  %606 = vmatmul.f32.vlgmr.msrb.gmra.mxu1 %v917_v19 }
 0x3e8   :  { %820 = vmatpush.msra.mxu3 %v1434_v20 }
 0x3ea   :  { %821 = vmatpush.msra.mxu3 %v1436_v21 }
 0x3ec   :  { %822 = vmatpush.msra.mxu3 %v1439_v22 }
 0x3ee   :  { %823 = vmatpush.msra.mxu3 %v1442_v23 }
 0x3f0   :  { %824 = vmatpush.msra.mxu3 %v1445_v24  ;;  %v765_v24 = vld [vmem:[#allocation2 + $0x30] sm:$0xff] }
 0x3f1   :  { %vm766_vm7 = vcmp.ne.f32.partialorder %v765_v24, %v765_v24 }
 0x3f2   :  { %825 = vmatpush.msra.mxu3 %v1448_v25 }
 0x3f4   :  { %826 = vmatpush.msra.mxu3 %v1451_v26 }
 0x3f6   :  { %827 = vmatpush.msra.mxu3 %v1454_v27 }
 0x3f8   :  { %828 = vmatpush.msra.mxu3 %v1457_v28 }
 0x3fa   :  { %829 = vmatpush.msra.mxu3 %v1460_v29 }
 0x3fc   :  { %830 = vmatpush.msra.mxu3 %v1465_v34 }
 0x3fe   :  { %831 = vmatpush.msra.mxu3 %v1468_v35 }
 0x400   :  { %832 = vmatpush.msra.mxu3 %v1471_v36 }
 0x402   :  { %833 = vmatpush.msra.mxu3 %v1474_v37 }
 0x404   :  { %834 = vmatpush.msra.mxu3 %v1476_v38 }
 0x406   :  { %835 = vmatpush.msra.mxu3 %v1479_v39 }
 0x464   :  { %v607_v54 = vpop.f32.mrf.mxu1 }
 0x46a   :  { %v529_v31 = vpop.f32.mrf.mxu3 }
 0x46b   :  { %v530_v32 = vadd.f32 %v1378_v56, %v529_v31 }
 0x46d   :  { %533 = vst [vmem:[#allocation8 + $0x18] sm:$0xff] %v530_v32  ;;  %v537_v33 = vsel %vm536_vm5, %v530_v32, %v535_v30 }
 0x46e   :  { %586 = vmatmul.f32.vlgmr.msrb.gmra.mxu0 %v537_v33 }
 0x46f   :  { %857 = vmatpush.msrb.mxu0 %v741_v63 }
 0x471   :  { %858 = vmatpush.msrb.mxu0 %v740_v0 }
 0x473   :  { %859 = vmatpush.msrb.mxu0 %v739_v1 }
 0x475   :  { %860 = vmatpush.msrb.mxu0 %v738_v2 }
 0x477   :  { %861 = vmatpush.msrb.mxu0 %v737_v3 }
 0x479   :  { %862 = vmatpush.msrb.mxu0 %v736_v4 }
 0x47b   :  { %863 = vmatpush.msrb.mxu0 %v735_v5 }
 0x47d   :  { %864 = vmatpush.msrb.mxu0 %v734_v6 }
 0x47f   :  { %865 = vmatpush.msrb.mxu0 %v733_v7 }
 0x481   :  { %866 = vmatpush.msrb.mxu0 %v732_v8 }
 0x483   :  { %867 = vmatpush.msrb.mxu0 %v731_v13 }
 0x485   :  { %868 = vmatpush.msrb.mxu0 %v730_v14 }
 0x487   :  { %869 = vmatpush.msrb.mxu0 %v729_v15 }
 0x489   :  { %870 = vmatpush.msrb.mxu0 %v728_v16 }
 0x48b   :  { %871 = vmatpush.msrb.mxu0 %v727_v17 }
 0x48d   :  { %872 = vmatpush.msrb.mxu0 %v726_v18 }
 0x4eb   :  { %v587_v52 = vpop.f32.mrf.mxu0 }
 0x4ec   :  { %v588_v53 = vadd.f32 %v1325_v50, %v587_v52 }
 0x4ee   :  { %v608_v55 = vadd.f32 %v607_v54, %v588_v53 }
 0x4f0   :  { %918 = vtanh.f32 %v608_v55 }
 0x4f6   :  { %v919_v57 = vpop.eup %918 }
 0x4f7   :  { %643 = vmatmul.f32.vlgmr.msrb.gmra.mxu2 %v919_v57  ;;  %721 = vmatmul.f32.vlgmr.msra.gmra.mxu0 %v919_v57 }
 0x574   :  { %v722_v21 = vpop.f32.mrf.mxu0 }
 0x57a   :  { %v644_v10 = vpop.f32.mrf.mxu2 }
 0x57b   :  { %v645_v11 = vadd.f32 %v1378_v56, %v644_v10 }
 0x57d   :  { %648 = vst [vmem:[#allocation8 + $0x20] sm:$0xff] %v645_v11  ;;  %v652_v12 = vsel %vm651_vm6, %v645_v11, %v650_v9 }
 0x57e   :  { %701 = vmatmul.f32.vlgmr.msrb.gmra.mxu3 %v652_v12 }
 0x601   :  { %v702_v19 = vpop.f32.mrf.mxu3 }
 0x602   :  { %v703_v20 = vadd.f32 %v1325_v50, %v702_v19 }
 0x604   :  { %v723_v22 = vadd.f32 %v722_v21, %v703_v20 }
 0x606   :  { %920 = vtanh.f32 %v723_v22 }
 0x60c   :  { %v921_v23 = vpop.eup %920 }
 0x60d   :  { %758 = vmatmul.f32.vlgmr.msra.gmra.mxu1 %v921_v23  ;;  %836 = vmatmul.f32.vlgmr.msra.gmra.mxu3 %v921_v23 }
 0x68a   :  { %v759_v25 = vpop.f32.mrf.mxu1 }
 0x68b   :  { %v760_v26 = vadd.f32 %v1378_v56, %v759_v25 }
 0x68d   :  { %763 = vst [vmem:[#allocation8 + $0x28] sm:$0xff] %v760_v26  ;;  %v767_v27 = vsel %vm766_vm7, %v760_v26, %v765_v24 }
 0x68e   :  { %816 = vmatmul.f32.vlgmr.msra.gmra.mxu2 %v767_v27 }
 0x690   :  { %v837_v30 = vpop.f32.mrf.mxu3 }
 0x711   :  { %v817_v28 = vpop.f32.mrf.mxu2 }
 0x712   :  { %v818_v29 = vadd.f32 %v1325_v50, %v817_v28 }
 0x714   :  { %v838_v31 = vadd.f32 %v837_v30, %v818_v29 }
 0x716   :  { %922 = vtanh.f32 %v838_v31 }
 0x71c   :  { %v923_v32 = vpop.eup %922 }
 0x71d   :  { %873 = vmatmul.f32.vlgmr.msrb.gmra.mxu0 %v923_v32 }
 0x79a   :  { %v874_v33 = vpop.f32.mrf.mxu0 }
 0x79b   :  { %v875_v34 = vadd.f32 %v1378_v56, %v874_v33 }
 0x79d   :  { %878 = vst [vmem:[#allocation8 + $0x30] sm:$0xff] %v875_v34 }
 0x79e   :  { %891 = dma.vmem_to_hbm [thread:$0]  %s884_s10, 896, %s886_s13, [#allocation4], %s1027_s26, %s1027_s26, %s1028_s27  }
 0x79f   :  { %1024 = dma.done.wait [#allocation4], 896  }
 0x7a0   :  { %1025 = vsyncadd [#allocation4], 4294966400 }
 0x7a1   :  { %896 = vsyncpa [#allocation3], 1 }
 0x7a2   :  { %897 = vsyncpa [#allocation6], 1 }
 0x7a3   :  { %898 = vsyncpa [#allocation4], 1 }

</bundles_post_ra>
